<compile_context>
chip_gen: v7x
topology: tpu7x:2x2x1
jax: 0.10.0
libtpu: 0.0.40
codegen_flags: <defaults>
</compile_context>

<pallas_src>
import functools

import jax
import jax.numpy as jnp
import numpy as np
from jax import lax
from jax.experimental import pallas as pl
from jax.experimental.pallas import tpu as pltpu


def _embedding_kernel(tok_ids_ref,   # SMEM: (B*T,) int32 token ids (scalar prefetch)
                      seg_ref,       # VMEM: (rows, 1) int32 segment ids (batch dim squeezed)
                      pos_ref,       # VMEM: (rows, Dp) f32 position rows for this tile
                      seg_tab_ref,   # VMEM: (2, Dp) f32 sentence table
                      tok_tab_hbm,   # HBM : (V, Dp) f32 token table (pl.ANY, manual DMA)
                      o_ref,         # VMEM: (rows, Dp) f32 output tile (batch dim squeezed)
                      dma_sems,      # DMA semaphores: (lookahead,)
                      *, seq_len, rows, chunk, lookahead, batch_axis):
    b = pl.program_id(batch_axis)
    t = pl.program_id(1 - batch_axis)
    row_base = b * seq_len + t * rows
    n_chunks = rows // chunk
    unroll = min(8, chunk)

    # ---- token-row gather: HBM -> output tile, `lookahead` chunks in flight ----
    def issue_chunk(c):
        base = row_base + c * chunk
        sem = dma_sems.at[c % lookahead]

        def issue_row(i, carry):
            tid = tok_ids_ref[base + i]      # SMEM read before any DMA start/wait
            pltpu.make_async_copy(
                tok_tab_hbm.at[pl.ds(tid, 1), :],
                o_ref.at[pl.ds(c * chunk + i, 1), :],
                sem,
            ).start()
            return carry

        lax.fori_loop(0, chunk, issue_row, 0, unroll=unroll)

    def wait_chunk(c):
        sem = dma_sems.at[c % lookahead]

        def wait_row(i, carry):
            # The descriptor only supplies the byte count to wait for; all row copies
            # of a chunk share `sem`, so `chunk` one-row waits drain it exactly.
            pltpu.make_async_copy(
                tok_tab_hbm.at[pl.ds(0, 1), :],
                o_ref.at[pl.ds(c * chunk + i, 1), :],
                sem,
            ).wait()
            return carry

        lax.fori_loop(0, chunk, wait_row, 0, unroll=unroll)

    # ---- segment embedding: 2-entry table -> VPU lerp (no K=2 matmul) ----
    seg0 = seg_tab_ref[0:1, :]                       # (1, Dp)
    dseg = seg_tab_ref[1:2, :] - seg0                # (1, Dp)

    def compute_chunk(c):
        lo = c * chunk
        hi = lo + chunk
        s = jnp.clip(seg_ref[lo:hi, :].astype(jnp.float32), 0.0, 1.0)   # (chunk, 1)
        seg_embd = seg0 + s * dseg                                      # (chunk, Dp)
        o_ref[lo:hi, :] = o_ref[lo:hi, :] + pos_ref[lo:hi, :] + seg_embd

    # Prime the gather pipeline, then wait / re-issue / compute per chunk so the
    # adds and lane-dense stores overlap the remaining in-flight row DMAs.
    for c in range(min(lookahead, n_chunks)):
        issue_chunk(c)
    for c in range(n_chunks):
        wait_chunk(c)
        if c + lookahead < n_chunks:
            issue_chunk(c + lookahead)
        compute_chunk(c)


def _pick_rows_per_step(T, Dp, itemsize=4):
    # Coarse tiles amortize the ~0.35us per-grid-step overhead, but keep each
    # (rows, Dp) tile at ~<=4 MiB so 2x pos + 2x out buffers stay well inside
    # v7x's 32 MiB scoped-VMEM default (64 MiB physical VMEM).
    max_rows = max(8, (4 << 20) // (Dp * itemsize))
    for cand in (512, 256, 128, 64, 32, 16, 8):
        if cand <= max_rows and T % cand == 0:
            return cand
    return T  # fall back to whole-sequence blocks (full-dim block is always legal)


def _pick_chunk_rows(rows):
    for cand in (64, 32, 16, 8, 4, 2, 1):
        if rows % cand == 0:
            return cand
    return rows


def embedding_forward(tokens, segment, tok_table, pos_table, seg_table,
                      *, rows_per_step=None, lookahead=2):
    B, T = tokens.shape
    V, D = tok_table.shape
    assert pos_table.shape == (T, D), "tokens seq length must equal max_length"
    assert seg_table.shape == (2, D)

    # Lane-dense embedding width (multiple of 128).  Real model widths (768/1024/...)
    # take the no-pad path; tiny test widths are zero-padded and sliced back afterward.
    Dp = ((D + 127) // 128) * 128
    if Dp != D:
        pad = ((0, 0), (0, Dp - D))
        tok_table = jnp.pad(tok_table, pad)
        pos_table = jnp.pad(pos_table, pad)
        seg_table = jnp.pad(seg_table, pad)

    rows = rows_per_step or _pick_rows_per_step(T, Dp)
    assert T % rows == 0
    chunk = _pick_chunk_rows(rows)
    n_chunks = rows // chunk
    lookahead = max(1, min(lookahead, n_chunks))
    t_blocks = T // rows

    # Batch innermost keeps the position tile resident across the inner loop
    # (pos HBM traffic: T*Dp instead of B*T*Dp).  If that would leave the leading
    # "parallel" axis degenerate (t_blocks == 1), lead with batch instead so both
    # TensorCores still get work on v7x.
    if t_blocks >= 2 or B == 1:
        grid = (t_blocks, B)
        batch_axis = 1
        seg_spec = pl.BlockSpec((None, rows, 1), lambda t, b, ids: (b, t, 0))
        pos_spec = pl.BlockSpec((rows, Dp), lambda t, b, ids: (t, 0))
        tab_spec = pl.BlockSpec((2, Dp), lambda t, b, ids: (0, 0))
        out_spec = pl.BlockSpec((None, rows, Dp), lambda t, b, ids: (b, t, 0))
    else:
        grid = (B, t_blocks)
        batch_axis = 0
        seg_spec = pl.BlockSpec((None, rows, 1), lambda b, t, ids: (b, t, 0))
        pos_spec = pl.BlockSpec((rows, Dp), lambda b, t, ids: (t, 0))
        tab_spec = pl.BlockSpec((2, Dp), lambda b, t, ids: (0, 0))
        out_spec = pl.BlockSpec((None, rows, Dp), lambda b, t, ids: (b, t, 0))

    tok_ids = tokens.reshape(-1).astype(jnp.int32)        # -> SMEM via scalar prefetch
    # TODO(synk): very large B*T would overflow SMEM scalar prefetch; stream ids per tile then.
    seg3d = segment.reshape(B, T, 1).astype(jnp.int32)    # layout prep only

    kernel = functools.partial(_embedding_kernel, seq_len=T, rows=rows, chunk=chunk,
                               lookahead=lookahead, batch_axis=batch_axis)

    out = pl.pallas_call(
        kernel,
        out_shape=jax.ShapeDtypeStruct((B, T, Dp), jnp.float32),
        grid_spec=pltpu.PrefetchScalarGridSpec(
            num_scalar_prefetch=1,
            grid=grid,
            in_specs=[
                seg_spec,                               # segment ids
                pos_spec,                               # position rows
                tab_spec,                               # sentence table
                pl.BlockSpec(memory_space=pl.ANY),      # token table stays in HBM
            ],
            out_specs=out_spec,
            scratch_shapes=[pltpu.SemaphoreType.DMA((lookahead,))],
        ),
        compiler_params=pltpu.CompilerParams(
            dimension_semantics=("parallel", "parallel"),
            vmem_limit_bytes=32 << 20,   # raises v5e's 16 MiB scoped default; <= v6e/v7x defaults
        ),
        cost_estimate=pl.CostEstimate(
            flops=3 * B * T * Dp,
            transcendentals=0,
            # token gather reads + output writes + position rows + sentence table + id arrays
            bytes_accessed=4 * (2 * B * T * Dp + T * Dp + 2 * Dp) + 4 * 2 * B * T,
        ),
    )(tok_ids, seg3d, pos_table, seg_table, tok_table)

    return out[..., :D] if Dp != D else out


if __name__ == "__main__":
    # Small deterministic configuration consistent with the module's __init__.
    vocab_size = 64
    n_embd = 32
    max_length = 8      # tokens seq length == max_length (same broadcast requirement as PyTorch)
    B = 2

    key = jax.random.PRNGKey(0)
    k_tok, k_pos, k_seg, k_ids, k_segid = jax.random.split(key, 5)

    # nn.Embedding default init: N(0, 1)
    token_embd_mat = jax.random.normal(k_tok, (vocab_size, n_embd), dtype=jnp.float32)
    position_embd_mat = jax.random.normal(k_pos, (max_length, n_embd), dtype=jnp.float32)
    sentence_embd_mat = jax.random.normal(k_seg, (2, n_embd), dtype=jnp.float32)

    tokens = jax.random.randint(k_ids, (B, max_length), 0, vocab_size, dtype=jnp.int32)
    segment = jax.random.randint(k_segid, (B, max_length), 0, 2, dtype=jnp.int32)

    out = embedding_forward(tokens, segment, token_embd_mat,
                            position_embd_mat, sentence_embd_mat)
    out = jax.block_until_ready(out)

    # Pure-JAX reference check.
    ref = (token_embd_mat[tokens]
           + position_embd_mat[None, :, :]
           + sentence_embd_mat[segment])
    np.testing.assert_allclose(np.asarray(out), np.asarray(ref), rtol=1e-5, atol=1e-5)

    print("KERNEL_OK")
</pallas_src>

<mosaic_0001>
module attributes {stable_mosaic.version = 11 : i64} {
  func.func @_embedding_kernel(%arg0: i32, %arg1: i32, %arg2: memref<16xi32, #tpu.memory_space<smem>>, %arg3: memref<1x8x1xi32, #tpu.memory_space<vmem>>, %arg4: memref<8x128xf32, #tpu.memory_space<vmem>>, %arg5: memref<2x128xf32, #tpu.memory_space<vmem>>, %arg6: memref<64x128xf32, #tpu.memory_space<any>>, %arg7: memref<1x8x128xf32, #tpu.memory_space<vmem>>, %arg8: memref<1x!tpu.dma_semaphore, #tpu.memory_space<semaphore_mem>>) attributes {dimension_semantics = [#tpu.dimension_semantics<parallel>, #tpu.dimension_semantics<parallel>], iteration_bounds = array<i64: 2, 1>, scalar_prefetch = 1 : i64, scratch_operands = 1 : i64, tpu.core_type = #tpu.core_type<tc>, window_params = [{transform_indices = @transform_0, window_bounds = array<i64: 1, 8, 1>}, {transform_indices = @transform_1, window_bounds = array<i64: 8, 128>}, {pipeline_mode = #tpu.pipeline_mode<synchronous>, transform_indices = @transform_2, window_bounds = array<i64: 2, 128>}, {}, {transform_indices = @transform_4, window_bounds = array<i64: 1, 8, 128>}]} {
    %c8_i32 = arith.constant 8 : i32
    %0 = arith.muli %arg0, %c8_i32 : i32
    %c8_i32_0 = arith.constant 8 : i32
    %1 = arith.muli %arg1, %c8_i32_0 : i32
    %2 = arith.addi %0, %1 : i32
    %c0 = arith.constant 0 : index
    %c0_1 = arith.constant 0 : index
    %3 = vector.load %arg5[%c0, %c0_1] : memref<2x128xf32, #tpu.memory_space<vmem>>, vector<1x128xf32>
    %c1 = arith.constant 1 : index
    %c0_2 = arith.constant 0 : index
    %4 = vector.load %arg5[%c1, %c0_2] : memref<2x128xf32, #tpu.memory_space<vmem>>, vector<1x128xf32>
    %5 = arith.subf %4, %3 : vector<1x128xf32>
    %c0_i32 = arith.constant 0 : i32
    %6 = arith.addi %2, %c0_i32 : i32
    %c0_i32_3 = arith.constant 0 : i32
    %c0_i32_4 = arith.constant 0 : i32
    %7 = arith.addi %6, %c0_i32_4 : i32
    %8 = arith.index_cast %7 : i32 to index
    %9 = memref.load %arg2[%8] : memref<16xi32, #tpu.memory_space<smem>>
    %c0_i32_5 = arith.constant 0 : i32
    %10 = arith.addi %c0_i32_5, %c0_i32_4 : i32
    %c0_i32_6 = arith.constant 0 : i32
    %11 = tpu.memref_slice %arg6[%9, %c0_i32_6] : memref<64x128xf32, #tpu.memory_space<any>> -> memref<1x128xf32, #tpu.memory_space<any>>
    %c0_i32_7 = arith.constant 0 : i32
    %c0_i32_8 = arith.constant 0 : i32
    %12 = tpu.memref_slice %arg7[%c0_i32_7, %10, %c0_i32_8] : memref<1x8x128xf32, #tpu.memory_space<vmem>> -> memref<1x1x128xf32, #tpu.memory_space<vmem>>
    %13 = tpu.memref_squeeze %12 : memref<1x1x128xf32, #tpu.memory_space<vmem>> -> memref<1x128xf32, #tpu.memory_space<vmem>>
    %14 = tpu.memref_slice %arg8[%c0_i32_3] : memref<1x!tpu.dma_semaphore, #tpu.memory_space<semaphore_mem>> -> memref<1x!tpu.dma_semaphore, #tpu.memory_space<semaphore_mem>>
    %15 = tpu.memref_squeeze %14 : memref<1x!tpu.dma_semaphore, #tpu.memory_space<semaphore_mem>> -> memref<!tpu.dma_semaphore, #tpu.memory_space<semaphore_mem>>
    tpu.enqueue_dma source(%11 : memref<1x128xf32, #tpu.memory_space<any>>) target(%13 : memref<1x128xf32, #tpu.memory_space<vmem>>) target_semaphore(%15 : memref<!tpu.dma_semaphore, #tpu.memory_space<semaphore_mem>>)
    %c1_i32 = arith.constant 1 : i32
    %16 = arith.addi %6, %c1_i32 : i32
    %17 = arith.index_cast %16 : i32 to index
    %18 = memref.load %arg2[%17] : memref<16xi32, #tpu.memory_space<smem>>
    %c0_i32_9 = arith.constant 0 : i32
    %19 = arith.addi %c0_i32_9, %c1_i32 : i32
    %c0_i32_10 = arith.constant 0 : i32
    %20 = tpu.memref_slice %arg6[%18, %c0_i32_10] : memref<64x128xf32, #tpu.memory_space<any>> -> memref<1x128xf32, #tpu.memory_space<any>>
    %c0_i32_11 = arith.constant 0 : i32
    %c0_i32_12 = arith.constant 0 : i32
    %21 = tpu.memref_slice %arg7[%c0_i32_11, %19, %c0_i32_12] : memref<1x8x128xf32, #tpu.memory_space<vmem>> -> memref<1x1x128xf32, #tpu.memory_space<vmem>>
    %22 = tpu.memref_squeeze %21 : memref<1x1x128xf32, #tpu.memory_space<vmem>> -> memref<1x128xf32, #tpu.memory_space<vmem>>
    %23 = tpu.memref_slice %arg8[%c0_i32_3] : memref<1x!tpu.dma_semaphore, #tpu.memory_space<semaphore_mem>> -> memref<1x!tpu.dma_semaphore, #tpu.memory_space<semaphore_mem>>
    %24 = tpu.memref_squeeze %23 : memref<1x!tpu.dma_semaphore, #tpu.memory_space<semaphore_mem>> -> memref<!tpu.dma_semaphore, #tpu.memory_space<semaphore_mem>>
    tpu.enqueue_dma source(%20 : memref<1x128xf32, #tpu.memory_space<any>>) target(%22 : memref<1x128xf32, #tpu.memory_space<vmem>>) target_semaphore(%24 : memref<!tpu.dma_semaphore, #tpu.memory_space<semaphore_mem>>)
    %c2_i32 = arith.constant 2 : i32
    %25 = arith.addi %6, %c2_i32 : i32
    %26 = arith.index_cast %25 : i32 to index
    %27 = memref.load %arg2[%26] : memref<16xi32, #tpu.memory_space<smem>>
    %c0_i32_13 = arith.constant 0 : i32
    %28 = arith.addi %c0_i32_13, %c2_i32 : i32
    %c0_i32_14 = arith.constant 0 : i32
    %29 = tpu.memref_slice %arg6[%27, %c0_i32_14] : memref<64x128xf32, #tpu.memory_space<any>> -> memref<1x128xf32, #tpu.memory_space<any>>
    %c0_i32_15 = arith.constant 0 : i32
    %c0_i32_16 = arith.constant 0 : i32
    %30 = tpu.memref_slice %arg7[%c0_i32_15, %28, %c0_i32_16] : memref<1x8x128xf32, #tpu.memory_space<vmem>> -> memref<1x1x128xf32, #tpu.memory_space<vmem>>
    %31 = tpu.memref_squeeze %30 : memref<1x1x128xf32, #tpu.memory_space<vmem>> -> memref<1x128xf32, #tpu.memory_space<vmem>>
    %32 = tpu.memref_slice %arg8[%c0_i32_3] : memref<1x!tpu.dma_semaphore, #tpu.memory_space<semaphore_mem>> -> memref<1x!tpu.dma_semaphore, #tpu.memory_space<semaphore_mem>>
    %33 = tpu.memref_squeeze %32 : memref<1x!tpu.dma_semaphore, #tpu.memory_space<semaphore_mem>> -> memref<!tpu.dma_semaphore, #tpu.memory_space<semaphore_mem>>
    tpu.enqueue_dma source(%29 : memref<1x128xf32, #tpu.memory_space<any>>) target(%31 : memref<1x128xf32, #tpu.memory_space<vmem>>) target_semaphore(%33 : memref<!tpu.dma_semaphore, #tpu.memory_space<semaphore_mem>>)
    %c3_i32 = arith.constant 3 : i32
    %34 = arith.addi %6, %c3_i32 : i32
    %35 = arith.index_cast %34 : i32 to index
    %36 = memref.load %arg2[%35] : memref<16xi32, #tpu.memory_space<smem>>
    %c0_i32_17 = arith.constant 0 : i32
    %37 = arith.addi %c0_i32_17, %c3_i32 : i32
    %c0_i32_18 = arith.constant 0 : i32
    %38 = tpu.memref_slice %arg6[%36, %c0_i32_18] : memref<64x128xf32, #tpu.memory_space<any>> -> memref<1x128xf32, #tpu.memory_space<any>>
    %c0_i32_19 = arith.constant 0 : i32
    %c0_i32_20 = arith.constant 0 : i32
    %39 = tpu.memref_slice %arg7[%c0_i32_19, %37, %c0_i32_20] : memref<1x8x128xf32, #tpu.memory_space<vmem>> -> memref<1x1x128xf32, #tpu.memory_space<vmem>>
    %40 = tpu.memref_squeeze %39 : memref<1x1x128xf32, #tpu.memory_space<vmem>> -> memref<1x128xf32, #tpu.memory_space<vmem>>
    %41 = tpu.memref_slice %arg8[%c0_i32_3] : memref<1x!tpu.dma_semaphore, #tpu.memory_space<semaphore_mem>> -> memref<1x!tpu.dma_semaphore, #tpu.memory_space<semaphore_mem>>
    %42 = tpu.memref_squeeze %41 : memref<1x!tpu.dma_semaphore, #tpu.memory_space<semaphore_mem>> -> memref<!tpu.dma_semaphore, #tpu.memory_space<semaphore_mem>>
    tpu.enqueue_dma source(%38 : memref<1x128xf32, #tpu.memory_space<any>>) target(%40 : memref<1x128xf32, #tpu.memory_space<vmem>>) target_semaphore(%42 : memref<!tpu.dma_semaphore, #tpu.memory_space<semaphore_mem>>)
    %c4_i32 = arith.constant 4 : i32
    %43 = arith.addi %6, %c4_i32 : i32
    %44 = arith.index_cast %43 : i32 to index
    %45 = memref.load %arg2[%44] : memref<16xi32, #tpu.memory_space<smem>>
    %c0_i32_21 = arith.constant 0 : i32
    %46 = arith.addi %c0_i32_21, %c4_i32 : i32
    %c0_i32_22 = arith.constant 0 : i32
    %47 = tpu.memref_slice %arg6[%45, %c0_i32_22] : memref<64x128xf32, #tpu.memory_space<any>> -> memref<1x128xf32, #tpu.memory_space<any>>
    %c0_i32_23 = arith.constant 0 : i32
    %c0_i32_24 = arith.constant 0 : i32
    %48 = tpu.memref_slice %arg7[%c0_i32_23, %46, %c0_i32_24] : memref<1x8x128xf32, #tpu.memory_space<vmem>> -> memref<1x1x128xf32, #tpu.memory_space<vmem>>
    %49 = tpu.memref_squeeze %48 : memref<1x1x128xf32, #tpu.memory_space<vmem>> -> memref<1x128xf32, #tpu.memory_space<vmem>>
    %50 = tpu.memref_slice %arg8[%c0_i32_3] : memref<1x!tpu.dma_semaphore, #tpu.memory_space<semaphore_mem>> -> memref<1x!tpu.dma_semaphore, #tpu.memory_space<semaphore_mem>>
    %51 = tpu.memref_squeeze %50 : memref<1x!tpu.dma_semaphore, #tpu.memory_space<semaphore_mem>> -> memref<!tpu.dma_semaphore, #tpu.memory_space<semaphore_mem>>
    tpu.enqueue_dma source(%47 : memref<1x128xf32, #tpu.memory_space<any>>) target(%49 : memref<1x128xf32, #tpu.memory_space<vmem>>) target_semaphore(%51 : memref<!tpu.dma_semaphore, #tpu.memory_space<semaphore_mem>>)
    %c5_i32 = arith.constant 5 : i32
    %52 = arith.addi %6, %c5_i32 : i32
    %53 = arith.index_cast %52 : i32 to index
    %54 = memref.load %arg2[%53] : memref<16xi32, #tpu.memory_space<smem>>
    %c0_i32_25 = arith.constant 0 : i32
    %55 = arith.addi %c0_i32_25, %c5_i32 : i32
    %c0_i32_26 = arith.constant 0 : i32
    %56 = tpu.memref_slice %arg6[%54, %c0_i32_26] : memref<64x128xf32, #tpu.memory_space<any>> -> memref<1x128xf32, #tpu.memory_space<any>>
    %c0_i32_27 = arith.constant 0 : i32
    %c0_i32_28 = arith.constant 0 : i32
    %57 = tpu.memref_slice %arg7[%c0_i32_27, %55, %c0_i32_28] : memref<1x8x128xf32, #tpu.memory_space<vmem>> -> memref<1x1x128xf32, #tpu.memory_space<vmem>>
    %58 = tpu.memref_squeeze %57 : memref<1x1x128xf32, #tpu.memory_space<vmem>> -> memref<1x128xf32, #tpu.memory_space<vmem>>
    %59 = tpu.memref_slice %arg8[%c0_i32_3] : memref<1x!tpu.dma_semaphore, #tpu.memory_space<semaphore_mem>> -> memref<1x!tpu.dma_semaphore, #tpu.memory_space<semaphore_mem>>
    %60 = tpu.memref_squeeze %59 : memref<1x!tpu.dma_semaphore, #tpu.memory_space<semaphore_mem>> -> memref<!tpu.dma_semaphore, #tpu.memory_space<semaphore_mem>>
    tpu.enqueue_dma source(%56 : memref<1x128xf32, #tpu.memory_space<any>>) target(%58 : memref<1x128xf32, #tpu.memory_space<vmem>>) target_semaphore(%60 : memref<!tpu.dma_semaphore, #tpu.memory_space<semaphore_mem>>)
    %c6_i32 = arith.constant 6 : i32
    %61 = arith.addi %6, %c6_i32 : i32
    %62 = arith.index_cast %61 : i32 to index
    %63 = memref.load %arg2[%62] : memref<16xi32, #tpu.memory_space<smem>>
    %c0_i32_29 = arith.constant 0 : i32
    %64 = arith.addi %c0_i32_29, %c6_i32 : i32
    %c0_i32_30 = arith.constant 0 : i32
    %65 = tpu.memref_slice %arg6[%63, %c0_i32_30] : memref<64x128xf32, #tpu.memory_space<any>> -> memref<1x128xf32, #tpu.memory_space<any>>
    %c0_i32_31 = arith.constant 0 : i32
    %c0_i32_32 = arith.constant 0 : i32
    %66 = tpu.memref_slice %arg7[%c0_i32_31, %64, %c0_i32_32] : memref<1x8x128xf32, #tpu.memory_space<vmem>> -> memref<1x1x128xf32, #tpu.memory_space<vmem>>
    %67 = tpu.memref_squeeze %66 : memref<1x1x128xf32, #tpu.memory_space<vmem>> -> memref<1x128xf32, #tpu.memory_space<vmem>>
    %68 = tpu.memref_slice %arg8[%c0_i32_3] : memref<1x!tpu.dma_semaphore, #tpu.memory_space<semaphore_mem>> -> memref<1x!tpu.dma_semaphore, #tpu.memory_space<semaphore_mem>>
    %69 = tpu.memref_squeeze %68 : memref<1x!tpu.dma_semaphore, #tpu.memory_space<semaphore_mem>> -> memref<!tpu.dma_semaphore, #tpu.memory_space<semaphore_mem>>
    tpu.enqueue_dma source(%65 : memref<1x128xf32, #tpu.memory_space<any>>) target(%67 : memref<1x128xf32, #tpu.memory_space<vmem>>) target_semaphore(%69 : memref<!tpu.dma_semaphore, #tpu.memory_space<semaphore_mem>>)
    %c7_i32 = arith.constant 7 : i32
    %70 = arith.addi %6, %c7_i32 : i32
    %71 = arith.index_cast %70 : i32 to index
    %72 = memref.load %arg2[%71] : memref<16xi32, #tpu.memory_space<smem>>
    %c0_i32_33 = arith.constant 0 : i32
    %73 = arith.addi %c0_i32_33, %c7_i32 : i32
    %c0_i32_34 = arith.constant 0 : i32
    %74 = tpu.memref_slice %arg6[%72, %c0_i32_34] : memref<64x128xf32, #tpu.memory_space<any>> -> memref<1x128xf32, #tpu.memory_space<any>>
    %c0_i32_35 = arith.constant 0 : i32
    %c0_i32_36 = arith.constant 0 : i32
    %75 = tpu.memref_slice %arg7[%c0_i32_35, %73, %c0_i32_36] : memref<1x8x128xf32, #tpu.memory_space<vmem>> -> memref<1x1x128xf32, #tpu.memory_space<vmem>>
    %76 = tpu.memref_squeeze %75 : memref<1x1x128xf32, #tpu.memory_space<vmem>> -> memref<1x128xf32, #tpu.memory_space<vmem>>
    %77 = tpu.memref_slice %arg8[%c0_i32_3] : memref<1x!tpu.dma_semaphore, #tpu.memory_space<semaphore_mem>> -> memref<1x!tpu.dma_semaphore, #tpu.memory_space<semaphore_mem>>
    %78 = tpu.memref_squeeze %77 : memref<1x!tpu.dma_semaphore, #tpu.memory_space<semaphore_mem>> -> memref<!tpu.dma_semaphore, #tpu.memory_space<semaphore_mem>>
    tpu.enqueue_dma source(%74 : memref<1x128xf32, #tpu.memory_space<any>>) target(%76 : memref<1x128xf32, #tpu.memory_space<vmem>>) target_semaphore(%78 : memref<!tpu.dma_semaphore, #tpu.memory_space<semaphore_mem>>)
    %c8_i32_37 = arith.constant 8 : i32
    %c0_i32_38 = arith.constant 0 : i32
    %c0_i32_39 = arith.constant 0 : i32
    %c0_i32_40 = arith.constant 0 : i32
    %79 = arith.addi %c0_i32_40, %c0_i32_39 : i32
    %c0_i32_41 = arith.constant 0 : i32
    %c0_i32_42 = arith.constant 0 : i32
    %80 = tpu.memref_slice %arg6[%c0_i32_41, %c0_i32_42] : memref<64x128xf32, #tpu.memory_space<any>> -> memref<1x128xf32, #tpu.memory_space<any>>
    %c0_i32_43 = arith.constant 0 : i32
    %c0_i32_44 = arith.constant 0 : i32
    %81 = tpu.memref_slice %arg7[%c0_i32_43, %79, %c0_i32_44] : memref<1x8x128xf32, #tpu.memory_space<vmem>> -> memref<1x1x128xf32, #tpu.memory_space<vmem>>
    %82 = tpu.memref_squeeze %81 : memref<1x1x128xf32, #tpu.memory_space<vmem>> -> memref<1x128xf32, #tpu.memory_space<vmem>>
    %83 = tpu.memref_slice %arg8[%c0_i32_38] : memref<1x!tpu.dma_semaphore, #tpu.memory_space<semaphore_mem>> -> memref<1x!tpu.dma_semaphore, #tpu.memory_space<semaphore_mem>>
    %84 = tpu.memref_squeeze %83 : memref<1x!tpu.dma_semaphore, #tpu.memory_space<semaphore_mem>> -> memref<!tpu.dma_semaphore, #tpu.memory_space<semaphore_mem>>
    tpu.wait_dma2 semaphore(%84 : memref<!tpu.dma_semaphore, #tpu.memory_space<semaphore_mem>>) src(%80 : memref<1x128xf32, #tpu.memory_space<any>>) dst(%82 : memref<1x128xf32, #tpu.memory_space<vmem>>)
    %c1_i32_45 = arith.constant 1 : i32
    %c0_i32_46 = arith.constant 0 : i32
    %85 = arith.addi %c0_i32_46, %c1_i32_45 : i32
    %c0_i32_47 = arith.constant 0 : i32
    %c0_i32_48 = arith.constant 0 : i32
    %86 = tpu.memref_slice %arg6[%c0_i32_47, %c0_i32_48] : memref<64x128xf32, #tpu.memory_space<any>> -> memref<1x128xf32, #tpu.memory_space<any>>
    %c0_i32_49 = arith.constant 0 : i32
    %c0_i32_50 = arith.constant 0 : i32
    %87 = tpu.memref_slice %arg7[%c0_i32_49, %85, %c0_i32_50] : memref<1x8x128xf32, #tpu.memory_space<vmem>> -> memref<1x1x128xf32, #tpu.memory_space<vmem>>
    %88 = tpu.memref_squeeze %87 : memref<1x1x128xf32, #tpu.memory_space<vmem>> -> memref<1x128xf32, #tpu.memory_space<vmem>>
    %89 = tpu.memref_slice %arg8[%c0_i32_38] : memref<1x!tpu.dma_semaphore, #tpu.memory_space<semaphore_mem>> -> memref<1x!tpu.dma_semaphore, #tpu.memory_space<semaphore_mem>>
    %90 = tpu.memref_squeeze %89 : memref<1x!tpu.dma_semaphore, #tpu.memory_space<semaphore_mem>> -> memref<!tpu.dma_semaphore, #tpu.memory_space<semaphore_mem>>
    tpu.wait_dma2 semaphore(%90 : memref<!tpu.dma_semaphore, #tpu.memory_space<semaphore_mem>>) src(%86 : memref<1x128xf32, #tpu.memory_space<any>>) dst(%88 : memref<1x128xf32, #tpu.memory_space<vmem>>)
    %c2_i32_51 = arith.constant 2 : i32
    %c0_i32_52 = arith.constant 0 : i32
    %91 = arith.addi %c0_i32_52, %c2_i32_51 : i32
    %c0_i32_53 = arith.constant 0 : i32
    %c0_i32_54 = arith.constant 0 : i32
    %92 = tpu.memref_slice %arg6[%c0_i32_53, %c0_i32_54] : memref<64x128xf32, #tpu.memory_space<any>> -> memref<1x128xf32, #tpu.memory_space<any>>
    %c0_i32_55 = arith.constant 0 : i32
    %c0_i32_56 = arith.constant 0 : i32
    %93 = tpu.memref_slice %arg7[%c0_i32_55, %91, %c0_i32_56] : memref<1x8x128xf32, #tpu.memory_space<vmem>> -> memref<1x1x128xf32, #tpu.memory_space<vmem>>
    %94 = tpu.memref_squeeze %93 : memref<1x1x128xf32, #tpu.memory_space<vmem>> -> memref<1x128xf32, #tpu.memory_space<vmem>>
    %95 = tpu.memref_slice %arg8[%c0_i32_38] : memref<1x!tpu.dma_semaphore, #tpu.memory_space<semaphore_mem>> -> memref<1x!tpu.dma_semaphore, #tpu.memory_space<semaphore_mem>>
    %96 = tpu.memref_squeeze %95 : memref<1x!tpu.dma_semaphore, #tpu.memory_space<semaphore_mem>> -> memref<!tpu.dma_semaphore, #tpu.memory_space<semaphore_mem>>
    tpu.wait_dma2 semaphore(%96 : memref<!tpu.dma_semaphore, #tpu.memory_space<semaphore_mem>>) src(%92 : memref<1x128xf32, #tpu.memory_space<any>>) dst(%94 : memref<1x128xf32, #tpu.memory_space<vmem>>)
    %c3_i32_57 = arith.constant 3 : i32
    %c0_i32_58 = arith.constant 0 : i32
    %97 = arith.addi %c0_i32_58, %c3_i32_57 : i32
    %c0_i32_59 = arith.constant 0 : i32
    %c0_i32_60 = arith.constant 0 : i32
    %98 = tpu.memref_slice %arg6[%c0_i32_59, %c0_i32_60] : memref<64x128xf32, #tpu.memory_space<any>> -> memref<1x128xf32, #tpu.memory_space<any>>
    %c0_i32_61 = arith.constant 0 : i32
    %c0_i32_62 = arith.constant 0 : i32
    %99 = tpu.memref_slice %arg7[%c0_i32_61, %97, %c0_i32_62] : memref<1x8x128xf32, #tpu.memory_space<vmem>> -> memref<1x1x128xf32, #tpu.memory_space<vmem>>
    %100 = tpu.memref_squeeze %99 : memref<1x1x128xf32, #tpu.memory_space<vmem>> -> memref<1x128xf32, #tpu.memory_space<vmem>>
    %101 = tpu.memref_slice %arg8[%c0_i32_38] : memref<1x!tpu.dma_semaphore, #tpu.memory_space<semaphore_mem>> -> memref<1x!tpu.dma_semaphore, #tpu.memory_space<semaphore_mem>>
    %102 = tpu.memref_squeeze %101 : memref<1x!tpu.dma_semaphore, #tpu.memory_space<semaphore_mem>> -> memref<!tpu.dma_semaphore, #tpu.memory_space<semaphore_mem>>
    tpu.wait_dma2 semaphore(%102 : memref<!tpu.dma_semaphore, #tpu.memory_space<semaphore_mem>>) src(%98 : memref<1x128xf32, #tpu.memory_space<any>>) dst(%100 : memref<1x128xf32, #tpu.memory_space<vmem>>)
    %c4_i32_63 = arith.constant 4 : i32
    %c0_i32_64 = arith.constant 0 : i32
    %103 = arith.addi %c0_i32_64, %c4_i32_63 : i32
    %c0_i32_65 = arith.constant 0 : i32
    %c0_i32_66 = arith.constant 0 : i32
    %104 = tpu.memref_slice %arg6[%c0_i32_65, %c0_i32_66] : memref<64x128xf32, #tpu.memory_space<any>> -> memref<1x128xf32, #tpu.memory_space<any>>
    %c0_i32_67 = arith.constant 0 : i32
    %c0_i32_68 = arith.constant 0 : i32
    %105 = tpu.memref_slice %arg7[%c0_i32_67, %103, %c0_i32_68] : memref<1x8x128xf32, #tpu.memory_space<vmem>> -> memref<1x1x128xf32, #tpu.memory_space<vmem>>
    %106 = tpu.memref_squeeze %105 : memref<1x1x128xf32, #tpu.memory_space<vmem>> -> memref<1x128xf32, #tpu.memory_space<vmem>>
    %107 = tpu.memref_slice %arg8[%c0_i32_38] : memref<1x!tpu.dma_semaphore, #tpu.memory_space<semaphore_mem>> -> memref<1x!tpu.dma_semaphore, #tpu.memory_space<semaphore_mem>>
    %108 = tpu.memref_squeeze %107 : memref<1x!tpu.dma_semaphore, #tpu.memory_space<semaphore_mem>> -> memref<!tpu.dma_semaphore, #tpu.memory_space<semaphore_mem>>
    tpu.wait_dma2 semaphore(%108 : memref<!tpu.dma_semaphore, #tpu.memory_space<semaphore_mem>>) src(%104 : memref<1x128xf32, #tpu.memory_space<any>>) dst(%106 : memref<1x128xf32, #tpu.memory_space<vmem>>)
    %c5_i32_69 = arith.constant 5 : i32
    %c0_i32_70 = arith.constant 0 : i32
    %109 = arith.addi %c0_i32_70, %c5_i32_69 : i32
    %c0_i32_71 = arith.constant 0 : i32
    %c0_i32_72 = arith.constant 0 : i32
    %110 = tpu.memref_slice %arg6[%c0_i32_71, %c0_i32_72] : memref<64x128xf32, #tpu.memory_space<any>> -> memref<1x128xf32, #tpu.memory_space<any>>
    %c0_i32_73 = arith.constant 0 : i32
    %c0_i32_74 = arith.constant 0 : i32
    %111 = tpu.memref_slice %arg7[%c0_i32_73, %109, %c0_i32_74] : memref<1x8x128xf32, #tpu.memory_space<vmem>> -> memref<1x1x128xf32, #tpu.memory_space<vmem>>
    %112 = tpu.memref_squeeze %111 : memref<1x1x128xf32, #tpu.memory_space<vmem>> -> memref<1x128xf32, #tpu.memory_space<vmem>>
    %113 = tpu.memref_slice %arg8[%c0_i32_38] : memref<1x!tpu.dma_semaphore, #tpu.memory_space<semaphore_mem>> -> memref<1x!tpu.dma_semaphore, #tpu.memory_space<semaphore_mem>>
    %114 = tpu.memref_squeeze %113 : memref<1x!tpu.dma_semaphore, #tpu.memory_space<semaphore_mem>> -> memref<!tpu.dma_semaphore, #tpu.memory_space<semaphore_mem>>
    tpu.wait_dma2 semaphore(%114 : memref<!tpu.dma_semaphore, #tpu.memory_space<semaphore_mem>>) src(%110 : memref<1x128xf32, #tpu.memory_space<any>>) dst(%112 : memref<1x128xf32, #tpu.memory_space<vmem>>)
    %c6_i32_75 = arith.constant 6 : i32
    %c0_i32_76 = arith.constant 0 : i32
    %115 = arith.addi %c0_i32_76, %c6_i32_75 : i32
    %c0_i32_77 = arith.constant 0 : i32
    %c0_i32_78 = arith.constant 0 : i32
    %116 = tpu.memref_slice %arg6[%c0_i32_77, %c0_i32_78] : memref<64x128xf32, #tpu.memory_space<any>> -> memref<1x128xf32, #tpu.memory_space<any>>
    %c0_i32_79 = arith.constant 0 : i32
    %c0_i32_80 = arith.constant 0 : i32
    %117 = tpu.memref_slice %arg7[%c0_i32_79, %115, %c0_i32_80] : memref<1x8x128xf32, #tpu.memory_space<vmem>> -> memref<1x1x128xf32, #tpu.memory_space<vmem>>
    %118 = tpu.memref_squeeze %117 : memref<1x1x128xf32, #tpu.memory_space<vmem>> -> memref<1x128xf32, #tpu.memory_space<vmem>>
    %119 = tpu.memref_slice %arg8[%c0_i32_38] : memref<1x!tpu.dma_semaphore, #tpu.memory_space<semaphore_mem>> -> memref<1x!tpu.dma_semaphore, #tpu.memory_space<semaphore_mem>>
    %120 = tpu.memref_squeeze %119 : memref<1x!tpu.dma_semaphore, #tpu.memory_space<semaphore_mem>> -> memref<!tpu.dma_semaphore, #tpu.memory_space<semaphore_mem>>
    tpu.wait_dma2 semaphore(%120 : memref<!tpu.dma_semaphore, #tpu.memory_space<semaphore_mem>>) src(%116 : memref<1x128xf32, #tpu.memory_space<any>>) dst(%118 : memref<1x128xf32, #tpu.memory_space<vmem>>)
    %c7_i32_81 = arith.constant 7 : i32
    %c0_i32_82 = arith.constant 0 : i32
    %121 = arith.addi %c0_i32_82, %c7_i32_81 : i32
    %c0_i32_83 = arith.constant 0 : i32
    %c0_i32_84 = arith.constant 0 : i32
    %122 = tpu.memref_slice %arg6[%c0_i32_83, %c0_i32_84] : memref<64x128xf32, #tpu.memory_space<any>> -> memref<1x128xf32, #tpu.memory_space<any>>
    %c0_i32_85 = arith.constant 0 : i32
    %c0_i32_86 = arith.constant 0 : i32
    %123 = tpu.memref_slice %arg7[%c0_i32_85, %121, %c0_i32_86] : memref<1x8x128xf32, #tpu.memory_space<vmem>> -> memref<1x1x128xf32, #tpu.memory_space<vmem>>
    %124 = tpu.memref_squeeze %123 : memref<1x1x128xf32, #tpu.memory_space<vmem>> -> memref<1x128xf32, #tpu.memory_space<vmem>>
    %125 = tpu.memref_slice %arg8[%c0_i32_38] : memref<1x!tpu.dma_semaphore, #tpu.memory_space<semaphore_mem>> -> memref<1x!tpu.dma_semaphore, #tpu.memory_space<semaphore_mem>>
    %126 = tpu.memref_squeeze %125 : memref<1x!tpu.dma_semaphore, #tpu.memory_space<semaphore_mem>> -> memref<!tpu.dma_semaphore, #tpu.memory_space<semaphore_mem>>
    tpu.wait_dma2 semaphore(%126 : memref<!tpu.dma_semaphore, #tpu.memory_space<semaphore_mem>>) src(%122 : memref<1x128xf32, #tpu.memory_space<any>>) dst(%124 : memref<1x128xf32, #tpu.memory_space<vmem>>)
    %c8_i32_87 = arith.constant 8 : i32
    %c0_88 = arith.constant 0 : index
    %c0_89 = arith.constant 0 : index
    %c0_90 = arith.constant 0 : index
    %127 = vector.load %arg3[%c0_88, %c0_89, %c0_90] : memref<1x8x1xi32, #tpu.memory_space<vmem>>, vector<1x8x1xi32>
    %128 = vector.shape_cast %127 : vector<1x8x1xi32> to vector<8x1xi32>
    %129 = arith.sitofp %128 : vector<8x1xi32> to vector<8x1xf32>
    %cst = arith.constant 0.000000e+00 : f32
    %cst_91 = arith.constant 1.000000e+00 : f32
    %130 = vector.broadcast %cst : f32 to vector<8x1xf32>
    %131 = arith.maximumf %130, %129 : vector<8x1xf32>
    %132 = vector.broadcast %cst_91 : f32 to vector<8x1xf32>
    %133 = arith.minimumf %132, %131 : vector<8x1xf32>
    %134 = vector.broadcast %133 : vector<8x1xf32> to vector<8x128xf32>
    %135 = vector.broadcast %5 : vector<1x128xf32> to vector<8x128xf32>
    %136 = arith.mulf %134, %135 : vector<8x128xf32>
    %137 = vector.broadcast %3 : vector<1x128xf32> to vector<8x128xf32>
    %138 = arith.addf %137, %136 : vector<8x128xf32>
    %c0_92 = arith.constant 0 : index
    %c0_93 = arith.constant 0 : index
    %c0_94 = arith.constant 0 : index
    %139 = vector.load %arg7[%c0_92, %c0_93, %c0_94] : memref<1x8x128xf32, #tpu.memory_space<vmem>>, vector<1x8x128xf32>
    %140 = vector.shape_cast %139 : vector<1x8x128xf32> to vector<8x128xf32>
    %c0_95 = arith.constant 0 : index
    %c0_96 = arith.constant 0 : index
    %141 = vector.load %arg4[%c0_95, %c0_96] : memref<8x128xf32, #tpu.memory_space<vmem>>, vector<8x128xf32>
    %142 = arith.addf %140, %141 : vector<8x128xf32>
    %143 = arith.addf %142, %138 : vector<8x128xf32>
    %c0_97 = arith.constant 0 : index
    %c0_98 = arith.constant 0 : index
    %c0_99 = arith.constant 0 : index
    %144 = vector.load %arg7[%c0_97, %c0_98, %c0_99] : memref<1x8x128xf32, #tpu.memory_space<vmem>>, vector<1x8x128xf32>
    %145 = vector.shape_cast %144 : vector<1x8x128xf32> to vector<8x128xf32>
    %146 = vector.shape_cast %143 : vector<8x128xf32> to vector<1x8x128xf32>
    tpu.vector_store %arg7[%c0_97, %c0_98, %c0_99], %146 {strides = array<i32>} : memref<1x8x128xf32, #tpu.memory_space<vmem>>, vector<1x8x128xf32>,
    return
  }
  func.func @transform_0(%arg0: i32, %arg1: i32, %arg2: memref<16xi32, #tpu.memory_space<smem>>) -> (i32, i32, i32) {
    %c0_i32 = arith.constant 0 : i32
    %c0_i32_0 = arith.constant 0 : i32
    return %arg0, %arg1, %c0_i32 : i32, i32, i32
  }
  func.func @transform_1(%arg0: i32, %arg1: i32, %arg2: memref<16xi32, #tpu.memory_space<smem>>) -> (i32, i32) {
    %c0_i32 = arith.constant 0 : i32
    %c0_i32_0 = arith.constant 0 : i32
    return %arg1, %c0_i32 : i32, i32
  }
  func.func @transform_2(%arg0: i32, %arg1: i32, %arg2: memref<16xi32, #tpu.memory_space<smem>>) -> (i32, i32) {
    %c0_i32 = arith.constant 0 : i32
    %c0_i32_0 = arith.constant 0 : i32
    %c0_i32_1 = arith.constant 0 : i32
    return %c0_i32, %c0_i32_0 : i32, i32
  }
  func.func @transform_4(%arg0: i32, %arg1: i32, %arg2: memref<16xi32, #tpu.memory_space<smem>>) -> (i32, i32, i32) {
    %c0_i32 = arith.constant 0 : i32
    %c0_i32_0 = arith.constant 0 : i32
    return %arg0, %arg1, %c0_i32 : i32, i32, i32
  }
}

</mosaic_0001>

<bundles_post_ra>
// kernel: tpu_custom_call.1
= control target key start
LH: loop header
LB: loop body
LE: loop exit
PB: predicated region body
PF: predicated region fallthrough
CT: control target
= control target key end

     0   :  { %s1207_s0 = inlined_call_operand.vmem [shape: s32[16], index: 0, kind: input, shape index: {}]   ;;  %s1208_s1 = inlined_call_operand.vmem [shape: s32[2,8,1], index: 1, kind: input, shape index: {}]   ;;  %s1209_s2 = inlined_call_operand.vmem [shape: f32[8,128], index: 2, kind: input, shape index: {}]   ;;  %s1210_s3 = inlined_call_operand.vmem [shape: f32[2,128], index: 3, kind: input, shape index: {}]   ;;  %s1211_s4 = inlined_call_operand.hbm [shape: f32[64,128], index: 4, kind: input, shape index: {}]   ;;  %s1212_s5 = inlined_call_operand.hbm [shape: f32[2,8,128], index: 5, kind: output, shape index: {}]  }
   0x1   :  { %1220 = sst [smem:[#allocation34_spill]] %s1208_s1  ;;  %s10_s20 = sshll.u32 %s1207_s0, 4  ;;  %s11_s20 = int_to_ptr.vmem [resolvable:$true] %s10_s20 }
   0x2   :  { %1221 = sst [smem:[#allocation35_spill]] %s1210_s3  ;;  %s592_s21 = scalar_lea.vmem %s11_s20, 16 }
   0x3   :  { %p593_p0 = scmp.ne.s32.totalorder %s11_s20, %s592_s21  ;;  %p597_p1 = scmp.lt.s32.totalorder %s11_s20, %s11_s20 }
   0x4   :  { %p598_p2 = scmp.lt.s32.totalorder %s592_s21, %s592_s21 }
   0x6   :  { %p599_p3 = por %p598_p2, %p597_p1 }
   0x8   :  { %p600_p4 = pnand %p599_p3, %p593_p0 }
   0xa   :  { %603 = shalt.err (!%p600_p4)  }
   0xb   :  { %s880_s22 = smov [#allocation4]  }
   0xc   :  { %13 = dma.vmem_to_smem %s11_s20, 16, %s880_s22, [#allocation3] }
   0xd   :  { %848 = dma.done.wait [#allocation3], 16 }
   0xe   :  { %849 = vsyncadd [#allocation3], 4294967280 }
   0xf   :  { %15 = sfence }
  0x10   :  { %16 = vsyncpa [#allocation6], 0 }
  0x11   :  { %18 = vsyncpa [#allocation6 + $0x1], 0  ;;  %s916_s23 = smov 0   ;;  %s918_s24 = smov 0  }
  0x12   :  { %s920_s0 = smov 0   ;;  %s922_s25 = smov 0  }
  0x13   :  { %s924_s26 = smov 0   ;;  %s926_s27 = smov 0  }
  0x14 LB: > { %1222 = sst [smem:[#allocation28_spill]] %s858_s23  ;;  %s512_s28 = sadd.s32 4294967295, %s878_s27   ;;  %s878_s27 = sphi %s926_s27, %s24_s27   ;;  %s874_s26 = sphi %s924_s26, %s1239_s26   ;;  %s870_s25 = sphi %s922_s25, %s1238_s25   ;;  %s866_s0 = sphi %s920_s0, %s1237_s0   ;;  %s862_s24 = sphi %s918_s24, %s1241_s24   ;;  %s858_s23 = sphi %s916_s23, %s1240_s23  }
  0x15   : > { %1223 = sst [smem:[#allocation29_spill]] %s866_s0  ;;  %s513_s29 = sadd.s32 4294967294, %s878_s27  }
  0x16   : > { %1224 = sst [smem:[#allocation30_spill]] %s874_s26  ;;  %s36_s30 = sadd.s32 1, %s874_s26 }
  0x17   : > { %s120_s6 = sadd.s32 1, %s866_s0  ;;  %p38_p5 = scmp.ge.s32.totalorder %s36_s30, 2 }
  0x18   : > { %p130_p6 = scmp.ne.s32.totalorder %s866_s0, %s862_s24  ;;  %p131_p7 = scmp.eq.s32.totalorder %s512_s28, 1 }
  0x19   : > { %p136_p8 = scmp.ne.s32.totalorder %s862_s24, %s858_s23  ;;  %s1243_s30 = smov (%p38_p5, %s36_s30), 0 }
  0x1a   : > { %1225 = sst [smem:[#allocation31_spill]] %s1243_s30  ;;  %p956_p9 = por %p131_p7, %p130_p6 }
  0x1b   : > { %p137_p10 = scmp.eq.s32.totalorder %s513_s29, 1  ;;  %s115_s8 = ssub.s32 %s874_s26, %s1243_s30 }
  0x1c   : > { %p517_p11 = scmp.ge.s32.totalorder %s878_s27, 1  ;;  %p118_p12 = scmp.eq.s32.totalorder %s115_s8, 0 }
  0x1d   : > { %p963_p13 = por %p137_p10, %p136_p8  ;;  %p175_p0 = scmp.lt.s32.totalorder %s878_s27, 3 }
  0x1e   : > { %s969_s10 = scalar_select %p118_p12, %s866_s0, %s120_s6  }
  0x1f   : > { %s1227_s9 = scalar_select %p963_p13, 1, 0 }
  0x20   : > { %1229 = sst [smem:[#allocation33_spill]] %s969_s10  ;;  %p176_p1 = pnand %p517_p11, %p175_p0 }
  0x21   : > { %1228 = sst [smem:[#allocation32_spill]] %s1227_s9  ;;  %s1213_s11 = sand.u32 (!%p176_p1), 1, %s862_s24  }
  0x22   : > { %179 = sbr.rel (%p176_p1) target bundleno = 377 (0x179), region = 32  ;;  %p205_p2 = scmp.lt.s32.totalorder (!%p176_p1), %s870_s25, 1 }
  0x23   : > { %s1230_s3 = sld [smem:[#allocation35_spill]] (!%p176_p1)  ;;  %s518_s16 = sshll.u32 (!%p176_p1), %s1213_s11, 3 }
  0x24   : > { %s986_s17 = sshll.u32 (!%p176_p1), %s870_s25, 3  ;;  %s992_s20 = scalar_lea.vmem (!%p176_p1), [#allocation5], %s518_s16 }
  0x25   : > { %s222_s18 = sld [smem:[#allocation4 + %s986_s17]] (!%p176_p1)  ;;  %s232_s21 = sshll.u32 (!%p176_p1), %s992_s20, 4  ;;  %s996_s21 = int_to_ptr.vmem [resolvable:$true] %s232_s21 }
  0x26   : > { %s236_s22 = sadd.s32 (!%p176_p1), 1, %s986_s17  ;;  %s1231_s1 = sld [smem:[#allocation34_spill]] (!%p176_p1) }
  0x27   : > { %s1003_s12 = sld [smem:[#allocation4 + %s236_s22]] (!%p176_p1)  ;;  %s240_s13 = scalar_lea.vmem (!%p176_p1), %s992_s20, 1 [#allocation5] }
  0x28   : > { %s252_s14 = sadd.s32 (!%p176_p1), 2, %s986_s17  ;;  %s248_s11 = sshll.u32 (!%p176_p1), %s240_s13, 4  ;;  %s1010_s11 = int_to_ptr.vmem [resolvable:$true] %s248_s11 }
  0x29   : > { %v976_v0 = vld [vmem:[%s1230_s3] sm:$0x1]  ;;  %v981_v1 = vld [vmem:[%s1230_s3 + $0x1] sm:$0x1]  ;;  %s206_s19 = scalar_select %p205_p2, %s870_s25, 1 }
  0x2a   : > { %v221_v2 = vsub.f32 %v981_v1, %v976_v0  ;;  %s1015_s29 = scalar_lea.hbm %s1211_s4, 1024 }
  0x2b   : > { %s519_s28 = sshll.u32 %s206_s19, 3  ;;  %s521_s15 = sshll.u32 %s222_s18, 4 }
  0x2c   : > { %s1001_s8 = scalar_lea.vmem %s1231_s1, %s519_s28  ;;  %s224_s30 = scalar_lea.hbm %s1211_s4, %s521_s15 }
  0x2d   : > { %s604_s19 = scalar_lea.hbm %s224_s30, 16  ;;  %p607_p4 = scmp.lt.u32.totalorder %s224_s30, %s1211_s4 }
  0x2e   : > { %p605_p3 = scmp.ne.s32.totalorder %s224_s30, %s604_s19  ;;  %p608_p5 = scmp.lt.u32.totalorder %s1015_s29, %s604_s19 }
  0x2f   : > { %p610_p7 = scmp.lt.u32.totalorder %s604_s19, %s224_s30 }
  0x30   : > { %p609_p6 = por %p608_p5, %p607_p4 }
  0x32   : > { %p611_p8 = por %p610_p7, %p609_p6 }
  0x34   : > { %p612_p10 = pnand %p611_p8, %p605_p3 }
  0x36   : > { %615 = shalt.err (!%p612_p10)  }
  0x37   : > { %s616_s3 = scalar_lea.vmem %s996_s21, 16  ;;  %s881_s26 = smov [#allocation5]  }
  0x38   : > { %p617_p11 = scmp.ne.s32.totalorder %s996_s21, %s616_s3  ;;  %s618_s10 = sshll.u32 %s881_s26, 4  ;;  %s1023_s10 = int_to_ptr.vmem [resolvable:$false] %s618_s10 }
  0x39   : > { %s1026_s18 = scalar_lea.vmem %s1023_s10, 256  ;;  %p1216_p12 = scmp.lt.s32.totalorder %s996_s21, %s1023_s10 }
  0x3a   : > { %p622_p0 = scmp.lt.s32.totalorder %s1026_s18, %s616_s3 }
  0x3c   : > { %p623_p1 = por %p622_p0, %p1216_p12 }
  0x3e   : > { %p624_p2 = pnand %p623_p1, %p617_p11 }
  0x40   : > { %627 = shalt.err (!%p624_p2)  }
  0x41   : > { %235 = dma.hbm_to_vmem [thread:$0]  %s224_s30, 16, %s996_s21, [#allocation2] }
  0x42   : > { %s1035_s6 = sld [smem:[#allocation4 + %s252_s14]]  ;;  %s256_s13 = scalar_lea.vmem %s992_s20, 2 [#allocation5] }
  0x43   : > { %s522_s15 = sshll.u32 %s1003_s12, 4  ;;  %s264_s16 = sshll.u32 %s256_s13, 4  ;;  %s1042_s16 = int_to_ptr.vmem [resolvable:$true] %s264_s16 }
  0x44   : > { %s239_s22 = scalar_lea.hbm %s1211_s4, %s522_s15 }
  0x45   : > { %s628_s3 = scalar_lea.hbm %s239_s22, 16  ;;  %p631_p4 = scmp.lt.u32.totalorder %s239_s22, %s1211_s4 }
  0x46   : > { %p629_p3 = scmp.ne.s32.totalorder %s239_s22, %s628_s3  ;;  %p632_p5 = scmp.lt.u32.totalorder %s1015_s29, %s628_s3 }
  0x47   : > { %p634_p7 = scmp.lt.u32.totalorder %s628_s3, %s239_s22 }
  0x48   : > { %p633_p6 = por %p632_p5, %p631_p4 }
  0x4a   : > { %p635_p8 = por %p634_p7, %p633_p6 }
  0x4c   : > { %p636_p10 = pnand %p635_p8, %p629_p3 }
  0x4e   : > { %639 = shalt.err (!%p636_p10)  }
  0x4f   : > { %s640_s30 = scalar_lea.vmem %s1010_s11, 16  ;;  %p645_p0 = scmp.lt.s32.totalorder %s1010_s11, %s1023_s10 }
  0x50   : > { %p641_p11 = scmp.ne.s32.totalorder %s1010_s11, %s640_s30  ;;  %p646_p1 = scmp.lt.s32.totalorder %s1026_s18, %s640_s30 }
  0x52   : > { %p647_p2 = por %p646_p1, %p645_p0 }
  0x54   : > { %p648_p12 = pnand %p647_p2, %p641_p11 }
  0x56   : > { %651 = shalt.err (!%p648_p12)  }
  0x57   : > { %251 = dma.hbm_to_vmem [thread:$0]  %s239_s22, 16, %s1010_s11, [#allocation2] }
  0x58   : > { %s268_s1 = sadd.s32 3, %s986_s17  ;;  %s272_s12 = scalar_lea.vmem %s992_s20, 3 [#allocation5] }
  0x59   : > { %s1056_s14 = sld [smem:[#allocation4 + %s268_s1]]  ;;  %s280_s13 = sshll.u32 %s272_s12, 4  ;;  %s1059_s13 = int_to_ptr.vmem [resolvable:$true] %s280_s13 }
  0x5a   : > { %s523_s15 = sshll.u32 %s1035_s6, 4  ;;  %s284_s26 = sadd.s32 4, %s986_s17 }
  0x5b   : > { %s255_s3 = scalar_lea.hbm %s1211_s4, %s523_s15 }
  0x5c   : > { %s652_s30 = scalar_lea.hbm %s255_s3, 16  ;;  %p655_p3 = scmp.lt.u32.totalorder %s255_s3, %s1211_s4 }
  0x5d   : > { %p653_p12 = scmp.ne.s32.totalorder %s255_s3, %s652_s30  ;;  %p656_p4 = scmp.lt.u32.totalorder %s1015_s29, %s652_s30 }
  0x5e   : > { %p658_p6 = scmp.lt.u32.totalorder %s652_s30, %s255_s3 }
  0x5f   : > { %p657_p5 = por %p656_p4, %p655_p3 }
  0x61   : > { %p659_p7 = por %p658_p6, %p657_p5 }
  0x63   : > { %p660_p8 = pnand %p659_p7, %p653_p12 }
  0x65   : > { %663 = shalt.err (!%p660_p8)  }
  0x66   : > { %s664_s11 = scalar_lea.vmem %s1042_s16, 16  ;;  %p669_p11 = scmp.lt.s32.totalorder %s1042_s16, %s1023_s10 }
  0x67   : > { %p665_p10 = scmp.ne.s32.totalorder %s1042_s16, %s664_s11  ;;  %p670_p0 = scmp.lt.s32.totalorder %s1026_s18, %s664_s11 }
  0x69   : > { %p671_p1 = por %p670_p0, %p669_p11 }
  0x6b   : > { %p672_p2 = pnand %p671_p1, %p665_p10 }
  0x6d   : > { %675 = shalt.err (!%p672_p2)  }
  0x6e   : > { %267 = dma.hbm_to_vmem [thread:$0]  %s255_s3, 16, %s1042_s16, [#allocation2] }
  0x6f   : > { %s1075_s0 = sld [smem:[#allocation4 + %s284_s26]]  ;;  %s288_s9 = scalar_lea.vmem %s992_s20, 4 [#allocation5] }
  0x70   : > { %s296_s6 = sshll.u32 %s288_s9, 4  ;;  %s300_s22 = sadd.s32 5, %s986_s17  ;;  %s1080_s6 = int_to_ptr.vmem [resolvable:$true] %s296_s6 }
  0x71   : > { %s524_s1 = sshll.u32 %s1056_s14, 4  ;;  %s1085_s28 = sld [smem:[#allocation4 + %s300_s22]] }
  0x72   : > { %s271_s19 = scalar_lea.hbm %s1211_s4, %s524_s1 }
  0x73   : > { %s676_s30 = scalar_lea.hbm %s271_s19, 16  ;;  %p679_p3 = scmp.lt.u32.totalorder %s271_s19, %s1211_s4 }
  0x74   : > { %p677_p12 = scmp.ne.s32.totalorder %s271_s19, %s676_s30  ;;  %p680_p4 = scmp.lt.u32.totalorder %s1015_s29, %s676_s30 }
  0x75   : > { %p682_p6 = scmp.lt.u32.totalorder %s676_s30, %s271_s19 }
  0x76   : > { %p681_p5 = por %p680_p4, %p679_p3 }
  0x78   : > { %p683_p7 = por %p682_p6, %p681_p5 }
  0x7a   : > { %p684_p8 = pnand %p683_p7, %p677_p12 }
  0x7c   : > { %687 = shalt.err (!%p684_p8)  }
  0x7d   : > { %s688_s16 = scalar_lea.vmem %s1059_s13, 16  ;;  %p693_p11 = scmp.lt.s32.totalorder %s1059_s13, %s1023_s10 }
  0x7e   : > { %p689_p10 = scmp.ne.s32.totalorder %s1059_s13, %s688_s16  ;;  %p694_p0 = scmp.lt.s32.totalorder %s1026_s18, %s688_s16 }
  0x80   : > { %p695_p1 = por %p694_p0, %p693_p11 }
  0x82   : > { %p696_p2 = pnand %p695_p1, %p689_p10 }
  0x84   : > { %699 = shalt.err (!%p696_p2)  }
  0x85   : > { %283 = dma.hbm_to_vmem [thread:$0]  %s271_s19, 16, %s1059_s13, [#allocation2] }
  0x86   : > { %s304_s23 = scalar_lea.vmem %s992_s20, 5 [#allocation5]  ;;  %s316_s14 = sadd.s32 6, %s986_s17 }
  0x87   : > { %s525_s3 = sshll.u32 %s1075_s0, 4  ;;  %s312_s26 = sshll.u32 %s304_s23, 4  ;;  %s1103_s26 = int_to_ptr.vmem [resolvable:$true] %s312_s26 }
  0x88   : > { %s287_s1 = scalar_lea.hbm %s1211_s4, %s525_s3 }
  0x89   : > { %s700_s12 = scalar_lea.hbm %s287_s1, 16  ;;  %p703_p3 = scmp.lt.u32.totalorder %s287_s1, %s1211_s4 }
  0x8a   : > { %p701_p12 = scmp.ne.s32.totalorder %s287_s1, %s700_s12  ;;  %p704_p4 = scmp.lt.u32.totalorder %s1015_s29, %s700_s12 }
  0x8b   : > { %p706_p6 = scmp.lt.u32.totalorder %s700_s12, %s287_s1 }
  0x8c   : > { %p705_p5 = por %p704_p4, %p703_p3 }
  0x8e   : > { %p707_p7 = por %p706_p6, %p705_p5 }
  0x90   : > { %p708_p8 = pnand %p707_p7, %p701_p12 }
  0x92   : > { %711 = shalt.err (!%p708_p8)  }
  0x93   : > { %s712_s13 = scalar_lea.vmem %s1080_s6, 16  ;;  %p717_p11 = scmp.lt.s32.totalorder %s1080_s6, %s1023_s10 }
  0x94   : > { %p713_p10 = scmp.ne.s32.totalorder %s1080_s6, %s712_s13  ;;  %p718_p0 = scmp.lt.s32.totalorder %s1026_s18, %s712_s13 }
  0x96   : > { %p719_p1 = por %p718_p0, %p717_p11 }
  0x98   : > { %p720_p2 = pnand %p719_p1, %p713_p10 }
  0x9a   : > { %723 = shalt.err (!%p720_p2)  }
  0x9b   : > { %299 = dma.hbm_to_vmem [thread:$0]  %s287_s1, 16, %s1080_s6, [#allocation2] }
  0x9c   : > { %s526_s0 = sshll.u32 %s1085_s28, 4  ;;  %s317_s19 = sld [smem:[#allocation4 + %s316_s14]] }
  0x9d   : > { %s303_s23 = scalar_lea.hbm %s1211_s4, %s526_s0  ;;  %s320_s3 = scalar_lea.vmem %s992_s20, 6 [#allocation5] }
  0x9e   : > { %s724_s9 = scalar_lea.hbm %s303_s23, 16  ;;  %p727_p3 = scmp.lt.u32.totalorder %s303_s23, %s1211_s4 }
  0x9f   : > { %p725_p12 = scmp.ne.s32.totalorder %s303_s23, %s724_s9  ;;  %p728_p4 = scmp.lt.u32.totalorder %s1015_s29, %s724_s9 }
  0xa0   : > { %p730_p6 = scmp.lt.u32.totalorder %s724_s9, %s303_s23 }
  0xa1   : > { %p729_p5 = por %p728_p4, %p727_p3 }
  0xa3   : > { %p731_p7 = por %p730_p6, %p729_p5 }
  0xa5   : > { %p732_p8 = pnand %p731_p7, %p725_p12 }
  0xa7   : > { %735 = shalt.err (!%p732_p8)  }
  0xa8   : > { %s736_s6 = scalar_lea.vmem %s1103_s26, 16  ;;  %p741_p11 = scmp.lt.s32.totalorder %s1103_s26, %s1023_s10 }
  0xa9   : > { %p737_p10 = scmp.ne.s32.totalorder %s1103_s26, %s736_s6  ;;  %p742_p0 = scmp.lt.s32.totalorder %s1026_s18, %s736_s6 }
  0xab   : > { %p743_p1 = por %p742_p0, %p741_p11 }
  0xad   : > { %p744_p2 = pnand %p743_p1, %p737_p10 }
  0xaf   : > { %747 = shalt.err (!%p744_p2)  }
  0xb0   : > { %315 = dma.hbm_to_vmem [thread:$0]  %s303_s23, 16, %s1103_s26, [#allocation2] }
  0xb1   : > { %s328_s28 = sshll.u32 %s320_s3, 4  ;;  %s332_s14 = sadd.s32 7, %s986_s17  ;;  %s329_s28 = int_to_ptr.vmem [resolvable:$true] %s328_s28 }
  0xb2   : > { %s333_s1 = sld [smem:[#allocation4 + %s332_s14]]  ;;  %s336_s15 = scalar_lea.vmem %s992_s20, 7 [#allocation5] }
  0xb3   : > { %s527_s30 = sshll.u32 %s317_s19, 4  ;;  %s344_s13 = sshll.u32 %s336_s15, 4  ;;  %s345_s13 = int_to_ptr.vmem [resolvable:$true] %s344_s13 }
  0xb4   : > { %s319_s16 = scalar_lea.hbm %s1211_s4, %s527_s30 }
  0xb5   : > { %s748_s9 = scalar_lea.hbm %s319_s16, 16  ;;  %p751_p3 = scmp.lt.u32.totalorder %s319_s16, %s1211_s4 }
  0xb6   : > { %p749_p12 = scmp.ne.s32.totalorder %s319_s16, %s748_s9  ;;  %p752_p4 = scmp.lt.u32.totalorder %s1015_s29, %s748_s9 }
  0xb7   : > { %p754_p6 = scmp.lt.u32.totalorder %s748_s9, %s319_s16 }
  0xb8   : > { %p753_p5 = por %p752_p4, %p751_p3 }
  0xba   : > { %p755_p7 = por %p754_p6, %p753_p5 }
  0xbc   : > { %p756_p8 = pnand %p755_p7, %p749_p12 }
  0xbe   : > { %759 = shalt.err (!%p756_p8)  }
  0xbf   : > { %s760_s17 = scalar_lea.vmem %s329_s28, 16  ;;  %p765_p11 = scmp.lt.s32.totalorder %s329_s28, %s1023_s10 }
  0xc0   : > { %p761_p10 = scmp.ne.s32.totalorder %s329_s28, %s760_s17  ;;  %p766_p0 = scmp.lt.s32.totalorder %s1026_s18, %s760_s17 }
  0xc2   : > { %p767_p1 = por %p766_p0, %p765_p11 }
  0xc4   : > { %p768_p2 = pnand %p767_p1, %p761_p10 }
  0xc6   : > { %771 = shalt.err (!%p768_p2)  }
  0xc7   : > { %331 = dma.hbm_to_vmem [thread:$0]  %s319_s16, 16, %s329_s28, [#allocation2] }
  0xc8   : > { %s528_s26 = sshll.u32 %s333_s1, 4 }
  0xc9   : > { %s335_s3 = scalar_lea.hbm %s1211_s4, %s528_s26 }
  0xca   : > { %s772_s6 = scalar_lea.hbm %s335_s3, 16  ;;  %p775_p3 = scmp.lt.u32.totalorder %s335_s3, %s1211_s4 }
  0xcb   : > { %p773_p12 = scmp.ne.s32.totalorder %s335_s3, %s772_s6  ;;  %p776_p4 = scmp.lt.u32.totalorder %s1015_s29, %s772_s6 }
  0xcc   : > { %p778_p6 = scmp.lt.u32.totalorder %s772_s6, %s335_s3 }
  0xcd   : > { %p777_p5 = por %p776_p4, %p775_p3 }
  0xcf   : > { %p779_p7 = por %p778_p6, %p777_p5 }
  0xd1   : > { %p780_p8 = pnand %p779_p7, %p773_p12 }
  0xd3   : > { %783 = shalt.err (!%p780_p8)  }
  0xd4   : > { %s784_s28 = scalar_lea.vmem %s345_s13, 16  ;;  %p789_p11 = scmp.lt.s32.totalorder %s345_s13, %s1023_s10 }
  0xd5   : > { %p785_p10 = scmp.ne.s32.totalorder %s345_s13, %s784_s28  ;;  %p790_p0 = scmp.lt.s32.totalorder %s1026_s18, %s784_s28 }
  0xd7   : > { %p791_p1 = por %p790_p0, %p789_p11 }
  0xd9   : > { %p792_p2 = pnand %p791_p1, %p785_p10 }
  0xdb   : > { %795 = shalt.err (!%p792_p2)  }
  0xdc   : > { %347 = dma.hbm_to_vmem [thread:$0]  %s335_s3, 16, %s345_s13, [#allocation2] }
  0xdd   : > { %850 = dma.done.wait [#allocation2], 128 }
  0xde   : > { %851 = vsyncadd [#allocation2], 4294967168  ;;  %v882_v3 = vmov 0   ;;  %v365_v4 = vld [vmem:[%s1001_s8] sm:$0xff]  ;;  %v374_v8 = vlaneseq  ;;  %s530_s8 = sshll.u32 %s870_s25, 7  ;;  %s1232_s11 = sand.u32 1, %s862_s24  }
  0xdf   : > { %591 = vset.pattern.permute.xlu0 %v882_v3  ;;  %v366_v5 = vcvt.s32.f32 %v365_v4  ;;  %v384_v12 = vld [vmem:[%s992_s20] sm:$0xff]  ;;  %s402_s0 = scalar_lea.hbm %s1212_s5, %s530_s8  ;;  %s390_s16 = scalar_lea.sflag [#allocation6], %s1232_s11 }
  0xe0   : > { %v375_v9 = vshrl.u32 %v374_v8, 7  ;;  %v385_v13 = vld [vmem:[%s1209_s2] sm:$0xff]  ;;  %s796_s9 = scalar_lea.vmem %s996_s21, 128  ;;  %p1233_p6 = scmp.lt.s32.totalorder %s996_s21, %s1023_s10 }
  0xe1   : > { %v367_v6 = vmax.f32 %v366_v5, 0.0  ;;  %v386_v16 = vadd.f32 %v385_v13, %v384_v12  ;;  %p797_p12 = scmp.ne.s32.totalorder %s996_s21, %s796_s9  ;;  %p804_p5 = scmp.lt.s32.totalorder %s1026_s18, %s796_s9 }
  0xe2   : > { %v376_v10 = vsub.s32 0, %v375_v9 }
  0xe3   : > { %v368_v7 = vmin.f32 %v367_v6, 1.0  ;;  %p798_p3 = pnand %p797_p12, %p956_p9  ;;  %p805_p7 = por %p804_p5, %p1233_p6 }
  0xe4   : > { %v377_v11 = vrot.slane %v221_v2, %v376_v10  ;;  %v382_v14 = vrot.slane %v976_v0, %v376_v10 }
  0xe5   : > { %371 = vperm.xlu0 %591, %v368_v7   ;;  %p799_p4 = pneg %p798_p3 }
  0xe7   : > { %p806_p8 = pnand %p805_p7, %p799_p4 }
 0x164   : > { %v372_v15 = vpop.permute.xlu0 %371 }
 0x165   : > { %v378_v17 = vmul.f32 %v377_v11, %v372_v15 }
 0x167   : > { %v383_v18 = vadd.f32 %v382_v14, %v378_v17 }
 0x169   : > { %v387_v19 = vadd.f32 %v386_v16, %v383_v18 }
 0x16b   : > { %388 = vst [vmem:[%s992_s20] sm:$0xff] %v387_v19 }
 0x16c   : > { %809 = shalt.err (!%p806_p8)
}
 0x16d   : > { %s810_s25 = scalar_lea.hbm %s402_s0, 128  ;;  %s814_s12 = scalar_lea.hbm %s1212_s5, 256 }
 0x16e   : > { %p811_p10 = scmp.ne.s32.totalorder %s402_s0, %s810_s25  ;;  %p815_p1 = scmp.lt.u32.totalorder %s402_s0, %s1212_s5 }
 0x16f   : > { %p816_p2 = scmp.lt.u32.totalorder %s814_s12, %s810_s25  ;;  %p818_p3 = scmp.lt.u32.totalorder %s810_s25, %s402_s0 }
 0x170   : > { %p812_p11 = pnand %p811_p10, %p956_p9 }
 0x171   : > { %p817_p12 = por %p816_p2, %p815_p1 }
 0x172   : > { %p813_p0 = pneg %p812_p11 }
 0x173   : > { %p819_p5 = por %p818_p3, %p817_p12 }
 0x175   : > { %p820_p4 = pnand %p819_p5, %p813_p0 }
 0x177   : > { %823 = shalt.err (!%p820_p4)
}
 0x178   : > { %534 = dma.vmem_to_hbm [thread:$0]  (%p956_p9), %s996_s21, 128, %s402_s0, %s390_s16  }
 0x179 PF: > { %s1234_s10 = sld [smem:[#allocation28_spill]]  ;;  %p540_p6 = scmp.ge.s32.totalorder %s878_s27, 2 }
 0x17b   : > { %p537_p7 = pnand %p540_p6, %p963_p13 }
 0x17f   : > { %s416_s19 = sand.u32 1, %s1234_s10  }
 0x180   : > { %s417_s23 = scalar_lea.sflag [#allocation6], %s416_s19 }
 0x181   : > { %853 = dma.done.wait (!%p537_p7), %s417_s23, 128  }
 0x182   : > { %855 = vsyncadd (!%p537_p7), %s417_s23, 4294967168  ;;  %s24_s27 = sadd.s32 1, %s878_s27   ;;  %s1236_s3 = sld [smem:[#allocation29_spill]] }
 0x183   : > { %p21_p8 = scmp.ge.s32.totalorder %s24_s27, 4   ;;  %s1237_s0 = sld [smem:[#allocation33_spill]] }
 0x184   : > { %s1238_s25 = sld [smem:[#allocation30_spill]]  ;;  %s1239_s26 = sld [smem:[#allocation31_spill]] }
 0x185   : > { %s1240_s23 = smov %s862_s24  ;;  %23 = sbr.rel (!%p21_p8) target bundleno = 20 (0x14), region = 117 }
 0x188   : > { %s1241_s24 = smov %s1236_s3 }
 0x18c   :  { %422 = vsyncpa [#allocation6], 1 }
 0x18d   :  { %424 = vsyncpa [#allocation6 + $0x1], 1 }
 0x18e   :  { %425 = vsyncmov [#allocation2] }
 0x191   :  { %s426_s7 = vpop.sfrf %425 }
 0x192   :  { %p533_p9 = scmp.ne.s32.totalorder %s426_s7, 0 }
 0x194   :  { %430 = shalt.err (%p533_p9)  }

</bundles_post_ra>
